<compile_context>
chip_gen: v5e
topology: v5e:2x2
jax: 0.10.0
libtpu: 0.0.40
codegen_flags: <defaults>
</compile_context>

<pallas_src>
import functools

import jax
import jax.numpy as jnp
from jax.experimental import pallas as pl
from jax.experimental.pallas import tpu as pltpu


def _gibbs_kernel(v0_ref, wt_ref, w_ref, b_ref, c_ref, uv_ref, uh_ref,
                  pv_ref, ph_ref, *, k):
    """One batch-block of a k-step block-Gibbs chain over an RBM.

    v0_ref : (Bblk, V)       f32   initial visible probabilities
    wt_ref : (V,  Hp)        bf16  beta * W^T   (Hp = H padded to mult of 128)
    w_ref  : (Hp, V)         bf16  beta * W
    b_ref  : (1,  V)         f32   beta * visible bias
    c_ref  : (1,  Hp)        f32   beta * hidden bias (zero in padding)
    uv_ref : (k+1, Bblk, V)  f32   U[0,1) draws for visible-side Bernoullis
    uh_ref : (k,   Bblk, Hp) f32   U[0,1) draws for hidden-side Bernoullis
    pv_ref : (Bblk, V)       f32   out: prob_v after k steps
    ph_ref : (Bblk, Hp)      f32   out: prob_h after k steps (padded)
    """
    bblk, v_dim = v0_ref.shape
    hp = w_ref.shape[0]

    wt = wt_ref[...]                                   # (V, Hp) bf16
    w = w_ref[...]                                     # (Hp, V) bf16
    # Hoist bias broadcasts out of the unrolled chain (JAX does not CSE them).
    b_full = jnp.broadcast_to(b_ref[...], (bblk, v_dim))
    c_full = jnp.broadcast_to(c_ref[...], (bblk, hp))

    def sigmoid(x):
        # exp lands on the EUP slot; keep f32 elementwise (v5e has no bf16 VPU/EUP).
        return 1.0 / (1.0 + jnp.exp(-x))

    def bern(p, u):
        # Bernoulli(p): single compare; {0,1} is exact in bf16, so the cast
        # for the MXU operand is lossless.
        return (u < p).astype(jnp.bfloat16)

    def hidden_probs(v_smpl):
        logits = jax.lax.dot_general(
            v_smpl, wt, (((1,), (0,)), ((), ())),
            preferred_element_type=jnp.float32)        # (Bblk, Hp)
        return sigmoid(logits + c_full)

    def visible_probs(h_smpl):
        logits = jax.lax.dot_general(
            h_smpl, w, (((1,), (0,)), ((), ())),
            preferred_element_type=jnp.float32)        # (Bblk, V)
        return sigmoid(logits + b_full)

    prob_v = v0_ref[...]                               # prob_vk = v0.clone()
    prob_h = hidden_probs(bern(prob_v, uv_ref[0]))     # model.forward(v0.bernoulli())

    def step(t, carry):
        pv, ph = carry
        pv = visible_probs(bern(ph, uh_ref[t]))        # model.generate(h.bernoulli())
        ph = hidden_probs(bern(pv, uv_ref[t + 1]))     # model.forward(v.bernoulli())
        return pv, ph

    if k <= 4:
        # Short chains: full unroll gives the scheduler the whole chain.
        for t in range(k):
            prob_v, prob_h = step(t, (prob_v, prob_h))
    else:
        # Long chains: keep code resident, bound vreg live ranges / compile time.
        prob_v, prob_h = jax.lax.fori_loop(0, k, step, (prob_v, prob_h), unroll=2)

    pv_ref[...] = prob_v
    ph_ref[...] = prob_h


def gibbs_forward(v0, w, b, c, key, *, beta=1.0, k=1, batch_block=None):
    """Pallas forward for the RBM network sampler.

    v0: (num_reads, V) initial visible probabilities in [0, 1]
    w : (H, V) RBM weights; b: (V,) visible bias; c: (H,) hidden bias
    Returns (prob_v, prob_h) of shapes (num_reads, V), (num_reads, H).
    """
    assert k >= 1
    B, V = v0.shape
    H = w.shape[0]
    Hp = ((H + 127) // 128) * 128          # lane-dense hidden width

    if batch_block is None:
        batch_block = B
    assert B % batch_block == 0
    n_blk = B // batch_block

    beta_f = jnp.float32(beta)
    # Zero-pad the hidden dimension: padded units have zero weights and zero
    # bias, so they never influence the visible units of the chain.
    w_pad = jnp.zeros((Hp, V), jnp.float32).at[:H, :].set(w.astype(jnp.float32))
    c_pad = jnp.zeros((Hp,), jnp.float32).at[:H].set(c.astype(jnp.float32))

    # Fold beta once (off the serial critical path); weights go bf16 for the MXU.
    w_s = (beta_f * w_pad).astype(jnp.bfloat16)        # (Hp, V)
    wt_s = w_s.T                                       # (V, Hp), materialized once
    b_s = (beta_f * b.astype(jnp.float32)).reshape(1, V)
    c_s = (beta_f * c_pad).reshape(1, Hp)

    # All Bernoulli uniforms are drawn up front with jax.random and streamed
    # into the kernel (the TPU stateful PRNG has no interpret/CPU lowering and
    # would need per-program seed offsets under the parallel batch grid).
    kv_key, kh_key = jax.random.split(key)
    uv = jax.random.uniform(kv_key, (k + 1, B, V), dtype=jnp.float32)
    uh = jax.random.uniform(kh_key, (k, B, Hp), dtype=jnp.float32)

    kernel = functools.partial(_gibbs_kernel, k=k)

    prob_v, prob_h_pad = pl.pallas_call(
        kernel,
        out_shape=(
            jax.ShapeDtypeStruct((B, V), jnp.float32),
            jax.ShapeDtypeStruct((B, Hp), jnp.float32),
        ),
        grid=(n_blk,),
        in_specs=[
            pl.BlockSpec((batch_block, V), lambda i: (i, 0)),             # v0
            pl.BlockSpec((V, Hp), lambda i: (0, 0)),                      # beta*W^T
            pl.BlockSpec((Hp, V), lambda i: (0, 0)),                      # beta*W
            pl.BlockSpec((1, V), lambda i: (0, 0)),                       # beta*b
            pl.BlockSpec((1, Hp), lambda i: (0, 0)),                      # beta*c
            pl.BlockSpec((k + 1, batch_block, V), lambda i: (0, i, 0)),   # uniforms (v-side)
            pl.BlockSpec((k, batch_block, Hp), lambda i: (0, i, 0)),      # uniforms (h-side)
        ],
        out_specs=(
            pl.BlockSpec((batch_block, V), lambda i: (i, 0)),             # prob_v
            pl.BlockSpec((batch_block, Hp), lambda i: (i, 0)),            # prob_h (padded)
        ),
        compiler_params=pltpu.CompilerParams(
            # Independent chains per batch block -> megacore split on v7x.
            dimension_semantics=("parallel",)),
    )(v0.astype(jnp.float32), wt_s, w_s, b_s, c_s, uv, uh)

    return prob_v, prob_h_pad[:, :H]


if __name__ == "__main__":
    # Small RBM: V=128 visible, H=64 hidden, 64 independent chains ("reads"),
    # split into 2 batch blocks of 32 rows each.
    B, V, H = 64, 128, 64
    k = 2
    beta = 1.0

    key = jax.random.PRNGKey(0)
    kv, kw, kb, kc, ks = jax.random.split(key, 5)

    # Deterministic synthetic RBM parameters (torch RBM shapes: W (H,V), b (V,), c (H,)).
    v0 = jax.random.uniform(kv, (B, V), dtype=jnp.float32)
    w = 0.1 * jax.random.normal(kw, (H, V), dtype=jnp.float32)
    b = 0.01 * jax.random.normal(kb, (V,), dtype=jnp.float32)
    c = 0.01 * jax.random.normal(kc, (H,), dtype=jnp.float32)

    prob_vk, prob_hk = gibbs_forward(v0, w, b, c, ks, beta=beta, k=k,
                                     batch_block=32)
    jax.block_until_ready((prob_vk, prob_hk))

    assert prob_vk.shape == (B, V) and prob_hk.shape == (B, H)
    assert bool(jnp.all(jnp.isfinite(prob_vk))) and bool(jnp.all(jnp.isfinite(prob_hk)))
    assert bool(jnp.all((prob_vk >= 0) & (prob_vk <= 1)))
    assert bool(jnp.all((prob_hk >= 0) & (prob_hk <= 1)))

    # TODO(synk): the D-Wave QPU call, minorminer embedding, dimod BQM and
    # spin-reversal/unembedding steps of the torch module have no Pallas
    # equivalent; this kernel is the classical Gibbs-sampling realization of
    # the same RBM distribution at inverse temperature beta.
    print("KERNEL_OK")
</pallas_src>

<mosaic_0001>
module attributes {stable_mosaic.version = 11 : i64} {
  func.func @_gibbs_kernel(%arg0: i32, %arg1: memref<32x128xf32, #tpu.memory_space<vmem>>, %arg2: memref<128x128xbf16, #tpu.memory_space<vmem>>, %arg3: memref<128x128xbf16, #tpu.memory_space<vmem>>, %arg4: memref<1x128xf32, #tpu.memory_space<vmem>>, %arg5: memref<1x128xf32, #tpu.memory_space<vmem>>, %arg6: memref<3x32x128xf32, #tpu.memory_space<vmem>>, %arg7: memref<2x32x128xf32, #tpu.memory_space<vmem>>, %arg8: memref<32x128xf32, #tpu.memory_space<vmem>>, %arg9: memref<32x128xf32, #tpu.memory_space<vmem>>) attributes {dimension_semantics = [#tpu.dimension_semantics<parallel>], iteration_bounds = array<i64: 2>, scalar_prefetch = 0 : i64, scratch_operands = 0 : i64, tpu.core_type = #tpu.core_type<tc>, window_params = [{transform_indices = @transform_0, window_bounds = array<i64: 32, 128>}, {pipeline_mode = #tpu.pipeline_mode<synchronous>, transform_indices = @transform_1, window_bounds = array<i64: 128, 128>}, {pipeline_mode = #tpu.pipeline_mode<synchronous>, transform_indices = @transform_2, window_bounds = array<i64: 128, 128>}, {pipeline_mode = #tpu.pipeline_mode<synchronous>, transform_indices = @transform_3, window_bounds = array<i64: 1, 128>}, {pipeline_mode = #tpu.pipeline_mode<synchronous>, transform_indices = @transform_4, window_bounds = array<i64: 1, 128>}, {transform_indices = @transform_5, window_bounds = array<i64: 3, 32, 128>}, {transform_indices = @transform_6, window_bounds = array<i64: 2, 32, 128>}, {transform_indices = @transform_7, window_bounds = array<i64: 32, 128>}, {transform_indices = @transform_8, window_bounds = array<i64: 32, 128>}]} {
    %c0 = arith.constant 0 : index
    %c0_0 = arith.constant 0 : index
    %0 = vector.load %arg2[%c0, %c0_0] : memref<128x128xbf16, #tpu.memory_space<vmem>>, vector<128x128xbf16>
    %c0_1 = arith.constant 0 : index
    %c0_2 = arith.constant 0 : index
    %1 = vector.load %arg3[%c0_1, %c0_2] : memref<128x128xbf16, #tpu.memory_space<vmem>>, vector<128x128xbf16>
    %c0_3 = arith.constant 0 : index
    %c0_4 = arith.constant 0 : index
    %2 = vector.load %arg4[%c0_3, %c0_4] : memref<1x128xf32, #tpu.memory_space<vmem>>, vector<1x128xf32>
    %3 = vector.shape_cast %2 : vector<1x128xf32> to vector<1x128xf32>
    %4 = vector.broadcast %3 : vector<1x128xf32> to vector<32x128xf32>
    %c0_5 = arith.constant 0 : index
    %c0_6 = arith.constant 0 : index
    %5 = vector.load %arg5[%c0_5, %c0_6] : memref<1x128xf32, #tpu.memory_space<vmem>>, vector<1x128xf32>
    %6 = vector.shape_cast %5 : vector<1x128xf32> to vector<1x128xf32>
    %7 = vector.broadcast %6 : vector<1x128xf32> to vector<32x128xf32>
    %c0_7 = arith.constant 0 : index
    %c0_8 = arith.constant 0 : index
    %8 = vector.load %arg1[%c0_7, %c0_8] : memref<32x128xf32, #tpu.memory_space<vmem>>, vector<32x128xf32>
    %c0_9 = arith.constant 0 : index
    %c0_10 = arith.constant 0 : index
    %c0_11 = arith.constant 0 : index
    %9 = vector.load %arg6[%c0_9, %c0_10, %c0_11] : memref<3x32x128xf32, #tpu.memory_space<vmem>>, vector<1x32x128xf32>
    %10 = vector.shape_cast %9 : vector<1x32x128xf32> to vector<32x128xf32>
    %11 = arith.cmpf olt, %10, %8 : vector<32x128xf32>
    %12 = arith.extui %11 : vector<32x128xi1> to vector<32x128xi32>
    %13 = arith.sitofp %12 : vector<32x128xi32> to vector<32x128xf32>
    %14 = arith.truncf %13 : vector<32x128xf32> to vector<32x128xbf16>
    %cst = arith.constant dense<0.000000e+00> : vector<32x128xf32>
    %15 = tpu.matmul %14, %0, %cst {dimension_numbers = #tpu.dot_dimension_numbers<[1], [0], [0], [1], [0, 0, 1, 1], [], []>} : vector<32x128xbf16>, vector<128x128xbf16>, vector<32x128xf32> -> vector<32x128xf32>
    %16 = arith.addf %15, %7 : vector<32x128xf32>
    %cst_12 = arith.constant 0.000000e+00 : f32
    %17 = vector.broadcast %cst_12 : f32 to vector<32x128xf32>
    %18 = arith.subf %17, %16 : vector<32x128xf32>
    %19 = math.exp %18 : vector<32x128xf32>
    %cst_13 = arith.constant 1.000000e+00 : f32
    %20 = vector.broadcast %cst_13 : f32 to vector<32x128xf32>
    %21 = arith.addf %20, %19 : vector<32x128xf32>
    %cst_14 = arith.constant 1.000000e+00 : f32
    %22 = vector.broadcast %cst_14 : f32 to vector<32x128xf32>
    %23 = arith.divf %22, %21 : vector<32x128xf32>
    %c0_15 = arith.constant 0 : index
    %c0_16 = arith.constant 0 : index
    %c0_17 = arith.constant 0 : index
    %24 = vector.load %arg7[%c0_15, %c0_16, %c0_17] : memref<2x32x128xf32, #tpu.memory_space<vmem>>, vector<1x32x128xf32>
    %25 = vector.shape_cast %24 : vector<1x32x128xf32> to vector<32x128xf32>
    %26 = arith.cmpf olt, %25, %23 : vector<32x128xf32>
    %27 = arith.extui %26 : vector<32x128xi1> to vector<32x128xi32>
    %28 = arith.sitofp %27 : vector<32x128xi32> to vector<32x128xf32>
    %29 = arith.truncf %28 : vector<32x128xf32> to vector<32x128xbf16>
    %cst_18 = arith.constant dense<0.000000e+00> : vector<32x128xf32>
    %30 = tpu.matmul %29, %1, %cst_18 {dimension_numbers = #tpu.dot_dimension_numbers<[1], [0], [0], [1], [0, 0, 1, 1], [], []>} : vector<32x128xbf16>, vector<128x128xbf16>, vector<32x128xf32> -> vector<32x128xf32>
    %31 = arith.addf %30, %4 : vector<32x128xf32>
    %cst_19 = arith.constant 0.000000e+00 : f32
    %32 = vector.broadcast %cst_19 : f32 to vector<32x128xf32>
    %33 = arith.subf %32, %31 : vector<32x128xf32>
    %34 = math.exp %33 : vector<32x128xf32>
    %cst_20 = arith.constant 1.000000e+00 : f32
    %35 = vector.broadcast %cst_20 : f32 to vector<32x128xf32>
    %36 = arith.addf %35, %34 : vector<32x128xf32>
    %cst_21 = arith.constant 1.000000e+00 : f32
    %37 = vector.broadcast %cst_21 : f32 to vector<32x128xf32>
    %38 = arith.divf %37, %36 : vector<32x128xf32>
    %c1 = arith.constant 1 : index
    %c0_22 = arith.constant 0 : index
    %c0_23 = arith.constant 0 : index
    %39 = vector.load %arg6[%c1, %c0_22, %c0_23] : memref<3x32x128xf32, #tpu.memory_space<vmem>>, vector<1x32x128xf32>
    %40 = vector.shape_cast %39 : vector<1x32x128xf32> to vector<32x128xf32>
    %41 = arith.cmpf olt, %40, %38 : vector<32x128xf32>
    %42 = arith.extui %41 : vector<32x128xi1> to vector<32x128xi32>
    %43 = arith.sitofp %42 : vector<32x128xi32> to vector<32x128xf32>
    %44 = arith.truncf %43 : vector<32x128xf32> to vector<32x128xbf16>
    %cst_24 = arith.constant dense<0.000000e+00> : vector<32x128xf32>
    %45 = tpu.matmul %44, %0, %cst_24 {dimension_numbers = #tpu.dot_dimension_numbers<[1], [0], [0], [1], [0, 0, 1, 1], [], []>} : vector<32x128xbf16>, vector<128x128xbf16>, vector<32x128xf32> -> vector<32x128xf32>
    %46 = arith.addf %45, %7 : vector<32x128xf32>
    %cst_25 = arith.constant 0.000000e+00 : f32
    %47 = vector.broadcast %cst_25 : f32 to vector<32x128xf32>
    %48 = arith.subf %47, %46 : vector<32x128xf32>
    %49 = math.exp %48 : vector<32x128xf32>
    %cst_26 = arith.constant 1.000000e+00 : f32
    %50 = vector.broadcast %cst_26 : f32 to vector<32x128xf32>
    %51 = arith.addf %50, %49 : vector<32x128xf32>
    %cst_27 = arith.constant 1.000000e+00 : f32
    %52 = vector.broadcast %cst_27 : f32 to vector<32x128xf32>
    %53 = arith.divf %52, %51 : vector<32x128xf32>
    %c1_28 = arith.constant 1 : index
    %c0_29 = arith.constant 0 : index
    %c0_30 = arith.constant 0 : index
    %54 = vector.load %arg7[%c1_28, %c0_29, %c0_30] : memref<2x32x128xf32, #tpu.memory_space<vmem>>, vector<1x32x128xf32>
    %55 = vector.shape_cast %54 : vector<1x32x128xf32> to vector<32x128xf32>
    %56 = arith.cmpf olt, %55, %53 : vector<32x128xf32>
    %57 = arith.extui %56 : vector<32x128xi1> to vector<32x128xi32>
    %58 = arith.sitofp %57 : vector<32x128xi32> to vector<32x128xf32>
    %59 = arith.truncf %58 : vector<32x128xf32> to vector<32x128xbf16>
    %cst_31 = arith.constant dense<0.000000e+00> : vector<32x128xf32>
    %60 = tpu.matmul %59, %1, %cst_31 {dimension_numbers = #tpu.dot_dimension_numbers<[1], [0], [0], [1], [0, 0, 1, 1], [], []>} : vector<32x128xbf16>, vector<128x128xbf16>, vector<32x128xf32> -> vector<32x128xf32>
    %61 = arith.addf %60, %4 : vector<32x128xf32>
    %cst_32 = arith.constant 0.000000e+00 : f32
    %62 = vector.broadcast %cst_32 : f32 to vector<32x128xf32>
    %63 = arith.subf %62, %61 : vector<32x128xf32>
    %64 = math.exp %63 : vector<32x128xf32>
    %cst_33 = arith.constant 1.000000e+00 : f32
    %65 = vector.broadcast %cst_33 : f32 to vector<32x128xf32>
    %66 = arith.addf %65, %64 : vector<32x128xf32>
    %cst_34 = arith.constant 1.000000e+00 : f32
    %67 = vector.broadcast %cst_34 : f32 to vector<32x128xf32>
    %68 = arith.divf %67, %66 : vector<32x128xf32>
    %c2 = arith.constant 2 : index
    %c0_35 = arith.constant 0 : index
    %c0_36 = arith.constant 0 : index
    %69 = vector.load %arg6[%c2, %c0_35, %c0_36] : memref<3x32x128xf32, #tpu.memory_space<vmem>>, vector<1x32x128xf32>
    %70 = vector.shape_cast %69 : vector<1x32x128xf32> to vector<32x128xf32>
    %71 = arith.cmpf olt, %70, %68 : vector<32x128xf32>
    %72 = arith.extui %71 : vector<32x128xi1> to vector<32x128xi32>
    %73 = arith.sitofp %72 : vector<32x128xi32> to vector<32x128xf32>
    %74 = arith.truncf %73 : vector<32x128xf32> to vector<32x128xbf16>
    %cst_37 = arith.constant dense<0.000000e+00> : vector<32x128xf32>
    %75 = tpu.matmul %74, %0, %cst_37 {dimension_numbers = #tpu.dot_dimension_numbers<[1], [0], [0], [1], [0, 0, 1, 1], [], []>} : vector<32x128xbf16>, vector<128x128xbf16>, vector<32x128xf32> -> vector<32x128xf32>
    %76 = arith.addf %75, %7 : vector<32x128xf32>
    %cst_38 = arith.constant 0.000000e+00 : f32
    %77 = vector.broadcast %cst_38 : f32 to vector<32x128xf32>
    %78 = arith.subf %77, %76 : vector<32x128xf32>
    %79 = math.exp %78 : vector<32x128xf32>
    %cst_39 = arith.constant 1.000000e+00 : f32
    %80 = vector.broadcast %cst_39 : f32 to vector<32x128xf32>
    %81 = arith.addf %80, %79 : vector<32x128xf32>
    %cst_40 = arith.constant 1.000000e+00 : f32
    %82 = vector.broadcast %cst_40 : f32 to vector<32x128xf32>
    %83 = arith.divf %82, %81 : vector<32x128xf32>
    %c0_41 = arith.constant 0 : index
    %c0_42 = arith.constant 0 : index
    %84 = vector.load %arg8[%c0_41, %c0_42] : memref<32x128xf32, #tpu.memory_space<vmem>>, vector<32x128xf32>
    tpu.vector_store %arg8[%c0_41, %c0_42], %68 {strides = array<i32>} : memref<32x128xf32, #tpu.memory_space<vmem>>, vector<32x128xf32>,
    %c0_43 = arith.constant 0 : index
    %c0_44 = arith.constant 0 : index
    %85 = vector.load %arg9[%c0_43, %c0_44] : memref<32x128xf32, #tpu.memory_space<vmem>>, vector<32x128xf32>
    tpu.vector_store %arg9[%c0_43, %c0_44], %83 {strides = array<i32>} : memref<32x128xf32, #tpu.memory_space<vmem>>, vector<32x128xf32>,
    return
  }
  func.func @transform_0(%arg0: i32) -> (i32, i32) {
    %c0_i32 = arith.constant 0 : i32
    %c0_i32_0 = arith.constant 0 : i32
    return %arg0, %c0_i32 : i32, i32
  }
  func.func @transform_1(%arg0: i32) -> (i32, i32) {
    %c0_i32 = arith.constant 0 : i32
    %c0_i32_0 = arith.constant 0 : i32
    %c0_i32_1 = arith.constant 0 : i32
    return %c0_i32, %c0_i32_0 : i32, i32
  }
  func.func @transform_2(%arg0: i32) -> (i32, i32) {
    %c0_i32 = arith.constant 0 : i32
    %c0_i32_0 = arith.constant 0 : i32
    %c0_i32_1 = arith.constant 0 : i32
    return %c0_i32, %c0_i32_0 : i32, i32
  }
  func.func @transform_3(%arg0: i32) -> (i32, i32) {
    %c0_i32 = arith.constant 0 : i32
    %c0_i32_0 = arith.constant 0 : i32
    %c0_i32_1 = arith.constant 0 : i32
    return %c0_i32, %c0_i32_0 : i32, i32
  }
  func.func @transform_4(%arg0: i32) -> (i32, i32) {
    %c0_i32 = arith.constant 0 : i32
    %c0_i32_0 = arith.constant 0 : i32
    %c0_i32_1 = arith.constant 0 : i32
    return %c0_i32, %c0_i32_0 : i32, i32
  }
  func.func @transform_5(%arg0: i32) -> (i32, i32, i32) {
    %c0_i32 = arith.constant 0 : i32
    %c0_i32_0 = arith.constant 0 : i32
    %c0_i32_1 = arith.constant 0 : i32
    return %c0_i32, %arg0, %c0_i32_0 : i32, i32, i32
  }
  func.func @transform_6(%arg0: i32) -> (i32, i32, i32) {
    %c0_i32 = arith.constant 0 : i32
    %c0_i32_0 = arith.constant 0 : i32
    %c0_i32_1 = arith.constant 0 : i32
    return %c0_i32, %arg0, %c0_i32_0 : i32, i32, i32
  }
  func.func @transform_7(%arg0: i32) -> (i32, i32) {
    %c0_i32 = arith.constant 0 : i32
    %c0_i32_0 = arith.constant 0 : i32
    return %arg0, %c0_i32 : i32, i32
  }
  func.func @transform_8(%arg0: i32) -> (i32, i32) {
    %c0_i32 = arith.constant 0 : i32
    %c0_i32_0 = arith.constant 0 : i32
    return %arg0, %c0_i32 : i32, i32
  }
}

</mosaic_0001>

<bundles_post_ra>
// kernel: tpu_custom_call.1
= control target key start
LH: loop header
LB: loop body
LE: loop exit
PB: predicated region body
PF: predicated region fallthrough
CT: control target
= control target key end

     0   :  { %s2417_s0 = inlined_call_operand.hbm [shape: f32[64,128], index: 0, kind: input, shape index: {}]   ;;  %s2418_s1 = inlined_call_operand.hbm [shape: bf16[128,128], index: 1, kind: input, shape index: {}]   ;;  %s2419_s2 = inlined_call_operand.hbm [shape: bf16[128,128], index: 2, kind: input, shape index: {}]   ;;  %s2420_s3 = inlined_call_operand.vmem [shape: f32[1,128], index: 3, kind: input, shape index: {}]   ;;  %s2421_s4 = inlined_call_operand.vmem [shape: f32[1,128], index: 4, kind: input, shape index: {}]   ;;  %s2422_s5 = inlined_call_operand.hbm [shape: f32[3,64,128], index: 5, kind: input, shape index: {}]   ;;  %s2423_s6 = inlined_call_operand.hbm [shape: f32[2,64,128], index: 6, kind: input, shape index: {}]   ;;  %s2424_s7 = inlined_call_operand.hbm [shape: f32[64,128], index: 7, kind: output, shape index: {0}]   ;;  %s2425_s8 = inlined_call_operand.hbm [shape: f32[64,128], index: 8, kind: output, shape index: {1}]  }
   0x1   :  { %2430 = sst [smem:[#allocation29_spill]] %s2418_s1 }
   0x2   :  { %2431 = sst [smem:[#allocation30_spill]] %s2419_s2 }
   0x3   :  { %14 = vsyncpa [#allocation3], 0 }
   0x4   :  { %16 = vsyncpa [#allocation3 + $0x1], 0 }
   0x5   :  { %17 = vsyncpa [#allocation6], 0 }
   0x6   :  { %18 = vsyncpa [#allocation9], 0 }
   0x7   :  { %20 = vsyncpa [#allocation9 + $0x1], 0 }
   0x8   :  { %21 = vsyncpa [#allocation4], 0 }
   0x9   :  { %23 = vsyncpa [#allocation4 + $0x1], 0 }
   0xa   :  { %24 = vsyncpa [#allocation13], 0 }
   0xb   :  { %26 = vsyncpa [#allocation13 + $0x1], 0  ;;  %s2055_s27 = smov 0   ;;  %s2057_s28 = smov 0  }
   0xc   :  { %s2059_s29 = smov 0   ;;  %s2061_s30 = smov 0  }
   0xd LB: > { %2432 = sst [smem:[#allocation25_spill]] %s1983_s29  ;;  %s2076_s9 = sadd.s32 4294967295, %s1987_s30   ;;  %s1987_s30 = sphi %s2061_s30, %s2444_s30   ;;  %s1983_s29 = sphi %s2059_s29, %s2446_s29   ;;  %s1979_s28 = sphi %s2057_s28, %s2448_s28   ;;  %s1975_s27 = sphi %s2055_s27, %s2447_s27  }
   0xe   : > { %s1428_s10 = sadd.s32 4294967294, %s1987_s30   ;;  %s2080_s11 = sadd.s32 1, %s1987_s30  }
   0xf   : > { %2433 = sst [smem:[#allocation26_spill]] %s2080_s11  ;;  %s39_s12 = sadd.s32 1, %s1983_s29 }
  0x10   : > { %s36_s13 = ssub.s32 %s1987_s30, %s2080_s11  ;;  %p46_p0 = scmp.ne.s32.totalorder %s1983_s29, %s1979_s28 }
  0x11   : > { %p37_p1 = scmp.eq.s32.totalorder %s36_s13, 0  ;;  %p47_p2 = scmp.eq.s32.totalorder %s1987_s30, 0 }
  0x12   : > { %p52_p3 = scmp.ne.s32.totalorder %s1979_s28, %s1975_s27  ;;  %p53_p4 = scmp.eq.s32.totalorder %s2076_s9, 0 }
  0x13   : > { %s2092_s14 = scalar_select %p37_p1, %s1983_s29, %s39_s12  }
  0x14   : > { %p2094_p5 = por %p47_p2, %p46_p0  ;;  %p2100_p6 = por %p53_p4, %p52_p3 }
  0x15   : > { %2434 = sst [smem:[#allocation27_spill]] %s2092_s14  ;;  %p212_p7 = scmp.eq.s32.totalorder %s2076_s9, 1 }
  0x16   : > { %p218_p8 = scmp.eq.s32.totalorder %s1428_s10, 1  ;;  %p1429_p9 = scmp.ge.s32.totalorder %s1987_s30, 1 }
  0x17   : > { %p251_p10 = scmp.lt.s32.totalorder %s1987_s30, 3  ;;  %p2107_p11 = por %p212_p7, %p46_p0 }
  0x18   : > { %p2111_p12 = por %p218_p8, %p52_p3  ;;  %s2441_s1 = sld [smem:[#allocation29_spill]] }
  0x19   : > { %p2115_p13 = pnand %p1429_p9, %p251_p10  ;;  %s1989_s23 = smov [#allocation5]  }
  0x1a   : > { %s2438_s18 = scalar_select %p2111_p12, 1, 0 }
  0x1b   : > { %p1639_p1 = pneg %p2115_p13  ;;  %s264_s24 = sshll.u32 %s1989_s23, 4  ;;  %s265_s24 = int_to_ptr.vmem [resolvable:$true] %s264_s24 }
  0x1c   : > { %2439 = sst [smem:[#allocation28_spill]] %s2438_s18  ;;  %s1990_s12 = smov 64  }
  0x1d   : > { %p1640_p0 = pnand %p1639_p1, %p53_p4  ;;  %s2442_s2 = sld [smem:[#allocation30_spill]] }
  0x1e   : > { %s262_s22 = sshll.u32 %s2441_s1, 4  ;;  %s1991_s13 = smov 4   ;;  %s263_s22 = int_to_ptr.hbm [resolvable:$true] %s262_s22 }
  0x1f   : > { %1642 = dma.hbm_to_vmem [thread:$0]  (!%p1640_p0), %s263_s22, 1024, %s265_s24, [#allocation6], %s1990_s12, %s1990_s12, %s1991_s13  }
  0x20   : > { %s1992_s14 = smov [#allocation7]   ;;  %p1432_p2 = scmp.ge.s32.totalorder %s1987_s30, 2 }
  0x21   : > { %s278_s20 = sshll.u32 %s1992_s14, 4  ;;  %s2133_s21 = sand.u32 (!%p1432_p2), 1, %s1983_s29   ;;  %s279_s20 = int_to_ptr.vmem [resolvable:$true] %s278_s20 }
  0x22   : > { %294 = sbr.rel (%p1432_p2) target bundleno = 79 (0x4f), region = 32  ;;  %s2136_s23 = sshll.u32 (!%p1432_p2), %s1987_s30, 5 }
  0x23   : > { %s276_s10 = sshll.u32 %s2442_s2, 4  ;;  %s1433_s22 = sshll.u32 (!%p1432_p2), %s2133_s21, 5  ;;  %s277_s10 = int_to_ptr.hbm [resolvable:$true] %s276_s10 }
  0x24   : > { %1645 = dma.hbm_to_vmem [thread:$0]  (!%p1640_p0), %s277_s10, 1024, %s279_s20, [#allocation6], %s1990_s12, %s1990_s12, %s1991_s13  }
  0x25   : > { %s307_s25 = scalar_lea.hbm (!%p1432_p2), %s2417_s0, %s2136_s23  ;;  %s302_s10 = scalar_lea.vmem (!%p1432_p2), [#allocation2], %s1433_s22 }
  0x26   : > { %s308_s26 = sshll.u32 (!%p1432_p2), %s307_s25, 4  ;;  %s310_s12 = sshll.u32 (!%p1432_p2), %s302_s10, 4  ;;  %s309_s26 = int_to_ptr.hbm [resolvable:$true] %s308_s26  ;;  %s311_s12 = int_to_ptr.vmem [resolvable:$true] %s310_s12 }
  0x27   : > { %s299_s13 = scalar_lea.sflag [#allocation3], %s2133_s21  ;;  %s1853_s20 = sshra.s32 %s309_s26, 4  ;;  %s1854_s20 = int_to_ptr.hbm [resolvable:$true] %s1853_s20 }
  0x28   : > { %s1855_s1 = scalar_lea.hbm %s1854_s20, 32  ;;  %s1859_s11 = scalar_lea.hbm %s2417_s0, 64 }
  0x29   : > { %p1856_p3 = scmp.ne.s32.totalorder %s1854_s20, %s1855_s1  ;;  %p1860_p9 = scmp.lt.s32.totalorder %s1854_s20, %s2417_s0 }
  0x2a   : > { %p1861_p10 = scmp.lt.s32.totalorder %s1859_s11, %s1855_s1 }
  0x2b   : > { %p1857_p7 = pnand %p1856_p3, %p2094_p5 }
  0x2c   : > { %p1862_p1 = por %p1861_p10, %p1860_p9 }
  0x2d   : > { %p1858_p8 = pneg %p1857_p7 }
  0x2f   : > { %p1863_p0 = pnand %p1862_p1, %p1858_p8 }
  0x31   : > { %1866 = shalt.err (!%p1863_p0)
}
  0x32   : > { %s1993_s22 = smov 128   ;;  %s1994_s14 = smov 8  }
  0x33   : > { %1611 = dma.hbm_to_vmem [thread:$0]  (%p2094_p5), %s309_s26, 512, %s311_s12, %s299_s13, %s1993_s22, %s1993_s22, %s1994_s14  }
  0x34   : > { %s320_s2 = sand.u32 1, %s1987_s30   ;;  %s1605_s29 = smul.u32 96, %s2133_s21 }
  0x35   : > { %s329_s1 = scalar_lea.hbm %s2422_s5, %s2136_s23  ;;  %s1995_s20 = smov 1024  }
  0x36   : > { %s342_s11 = sshll.u32 %s329_s1, 4  ;;  %s324_s26 = scalar_lea.vmem [#allocation8], %s1605_s29  ;;  %s343_s11 = int_to_ptr.hbm [resolvable:$true] %s342_s11 }
  0x37   : > { %s1612_s10 = scalar_select %p2094_p5, [#allocation0], [#allocation18] }
  0x38   : > { %s344_s12 = sshll.u32 %s324_s26, 4  ;;  %1613 = sst [smem:[#allocation15]] (%p2094_p5), %s1995_s20  ;;  %s345_s12 = int_to_ptr.vmem [resolvable:$true] %s344_s12 }
  0x39   : > { %s334_s13 = sld [smem:[%s1612_s10]]   ;;  %s1996_s24 = smov 512  }
  0x3a   : > { %1614 = sst [smem:[#allocation15 + $0x1]] (%p2094_p5), %s1996_s24  ;;  %s1997_s22 = smov 4  }
  0x3b   : > { %1615 = sst [smem:[#allocation15 + $0x2]] (%p2094_p5), %s1997_s22  ;;  %s1998_s14 = smov 128  }
  0x3c   : > { %1616 = sst [smem:[#allocation15 + $0x3]] (%p2094_p5), %s1998_s14  ;;  %s1999_s25 = smov 8  }
  0x3d   : > { %1617 = sst [smem:[#allocation15 + $0x4]] (%p2094_p5), %s1998_s14  ;;  %s2174_s1 = scalar_lea.sflag [#allocation9], %s320_s2 }
  0x3e   : > { %1618 = sst [smem:[#allocation15 + $0x5]] (%p2094_p5), %s1999_s25  ;;  %s2000_s10 = smov [#allocation14]  }
  0x3f   : > { %s1438_s18 = sshll.u32 %s334_s13, 26 }
  0x40   : > { %s1439_s29 = sadd.s32 134217728, %s1438_s18 }
  0x41   : > { %1619 = dma.general (%p2094_p5), %s343_s11, 1536, %s345_s12, %s2174_s1, %s2000_s10, [#allocation15], %s1439_s29, 0  }
  0x42   : > { %s1440_s26 = sshll.u32 %s2133_s21, 6  ;;  %s376_s24 = scalar_lea.hbm %s2423_s6, %s2136_s23 }
  0x43   : > { %s389_s22 = sshll.u32 %s376_s24, 4  ;;  %s371_s14 = scalar_lea.vmem [#allocation10], %s1440_s26  ;;  %s390_s22 = int_to_ptr.hbm [resolvable:$true] %s389_s22 }
  0x44   : > { %s1620_s2 = scalar_select %p2094_p5, [#allocation0], [#allocation19] }
  0x45   : > { %s391_s11 = sshll.u32 %s371_s14, 4  ;;  %s2001_s18 = smov 1024   ;;  %s392_s11 = int_to_ptr.vmem [resolvable:$true] %s391_s11 }
  0x46   : > { %s381_s12 = sld [smem:[%s1620_s2]]   ;;  %s2002_s21 = smov 512  }
  0x47   : > { %1621 = sst [smem:[#allocation17]] (%p2094_p5), %s2001_s18  ;;  %s2003_s29 = smov 4  }
  0x48   : > { %1622 = sst [smem:[#allocation17 + $0x1]] (%p2094_p5), %s2002_s21  ;;  %s2004_s23 = smov 128  }
  0x49   : > { %1623 = sst [smem:[#allocation17 + $0x2]] (%p2094_p5), %s2003_s29  ;;  %s2005_s26 = smov 8  }
  0x4a   : > { %1624 = sst [smem:[#allocation17 + $0x3]] (%p2094_p5), %s2004_s23  ;;  %s2006_s13 = smov [#allocation16]  }
  0x4b   : > { %1625 = sst [smem:[#allocation17 + $0x4]] (%p2094_p5), %s2004_s23 }
  0x4c   : > { %s1443_s25 = sshll.u32 %s381_s12, 26  ;;  %1626 = sst [smem:[#allocation17 + $0x5]] (%p2094_p5), %s2005_s26 }
  0x4d   : > { %s1444_s10 = sadd.s32 134217728, %s1443_s25 }
  0x4e   : > { %1627 = dma.general (%p2094_p5), %s390_s22, 1024, %s392_s11, %s2174_s1, %s2006_s13, [#allocation17], %s1444_s10, 0  }
  0x4f PF: > { %416 = sbr.rel (%p2115_p13) target bundleno = 992 (0x3e0), region = 48  ;;  %s2204_s20 = sand.u32 (!%p2115_p13), 1, %s1979_s28  }
  0x50   : > { %s2207_s24 = sshll.u32 (!%p2115_p13), %s2204_s20, 5  ;;  %s419_s2 = scalar_lea.sflag (!%p2115_p13), [#allocation3], %s2204_s20 }
  0x51   : > { %s2211_s14 = scalar_lea.vmem (!%p2115_p13), [#allocation2], %s2207_s24 }
  0x54   : > { %1954 = dma.done.wait (%p2100_p6), %s419_s2, 512  }
  0x55   : > { %1956 = vsyncadd (%p2100_p6), %s419_s2, 4294966784 }
  0x56   : > { %1958 = dma.done.wait (%p53_p4), [#allocation6], 2048  }
  0x57   : > { %1960 = vsyncadd (%p53_p4), [#allocation6], 4294965248  ;;  %s438_s15 = sand.u32 1, %s2076_s9   ;;  %s1606_s19 = smul.u32 96, %s2204_s20 }
  0x58   : > { %s439_s1 = scalar_lea.sflag [#allocation9], %s438_s15 }
  0x59   : > { %s2223_s22 = scalar_lea.vmem [#allocation8], %s1606_s19 }
  0x5a   : > { %1962 = dma.done.wait (%p2100_p6), %s439_s1, 2560  }
  0x5b   : > { %1964 = vsyncadd (%p2100_p6), %s439_s1, 4294964736  ;;  %v2229_v0 = vld [vmem:[#allocation5 + $0x38] sm:$0xff]  ;;  %v2232_v1 = vld [vmem:[#allocation5 + $0x30] sm:$0xff]  ;;  %v2007_v12 = vmov 1.0|1.0   ;;  %s1449_s12 = sshll.u32 %s2204_s20, 6 }
  0x5c   : > { %616 = vmatpush.bf16.msra.mxu0 %v2229_v0  ;;  %891 = vmatpush.bf16.msra.mxu2 %v2229_v0  ;;  %v2236_v2 = vld [vmem:[#allocation5 + $0x28] sm:$0xff]  ;;  %v2240_v3 = vld [vmem:[#allocation5 + $0x20] sm:$0xff]  ;;  %v2244_v4 = vld [vmem:[#allocation5 + $0x18] sm:$0xff]  ;;  %s2297_s18 = scalar_lea.vmem [#allocation10], %s1449_s12  ;;  %s2335_s23 = scalar_lea.vmem [#allocation11], %s2207_s24 }
  0x5d   : > { %v2248_v5 = vld [vmem:[#allocation5 + $0x10] sm:$0xff]  ;;  %v2252_v6 = vld [vmem:[#allocation5 + $0x8] sm:$0xff]  ;;  %v546_v7 = vld [vmem:[%s2211_s14] sm:$0xff]  ;;  %s1240_s25 = sshll.u32 %s2335_s23, 4  ;;  %s1595_s10 = sshll.u32 %s2076_s9, 5  ;;  %s1241_s25 = int_to_ptr.vmem [resolvable:$true] %s1240_s25 }
  0x5e   : > { %v547_v8 = vld [vmem:[%s2211_s14 + $0x8] sm:$0xff]  ;;  %v550_v9 = vld [vmem:[%s2223_s22] sm:$0xff]  ;;  %v548_v13 = vld [vmem:[%s2211_s14 + $0x10] sm:$0xff]  ;;  %s1239_s2 = scalar_lea.hbm %s2424_s7, %s1595_s10  ;;  %s1223_s15 = scalar_lea.sflag [#allocation4], %s2204_s20 }
  0x5f   : > { %v551_v10 = vld [vmem:[%s2223_s22 + $0x8] sm:$0xff]  ;;  %v2260_v11 = vld [vmem:[#allocation5] sm:$0xff]  ;;  %vm554_vm0 = vcmp.lt.f32.partialorder %v550_v9, %v546_v7  ;;  %v549_v14 = vld [vmem:[%s2211_s14 + $0x18] sm:$0xff]  ;;  %s1242_s14 = sshll.u32 %s1239_s2, 4  ;;  %s1901_s11 = scalar_lea.hbm %s2424_s7, 64  ;;  %s1243_s14 = int_to_ptr.hbm [resolvable:$true] %s1242_s14 }
  0x60   : > { %617 = vmatpush.bf16.msra.mxu0 %v2232_v1  ;;  %892 = vmatpush.bf16.msra.mxu2 %v2232_v1  ;;  %vm555_vm1 = vcmp.lt.f32.partialorder %v551_v10, %v547_v8  ;;  %v552_v15 = vld [vmem:[%s2223_s22 + $0x10] sm:$0xff]  ;;  %v553_v16 = vld [vmem:[%s2223_s22 + $0x18] sm:$0xff]  ;;  %v1592_v19 = vld [vmem:[#allocation7 + $0x28] sm:$0xff]  ;;  %s1895_s19 = sshra.s32 %s1243_s14, 4  ;;  %s1896_s19 = int_to_ptr.hbm [resolvable:$true] %s1895_s19 }
  0x61   : > { %vm1488_vm2 = vmpackc.low %vm555_vm1, %vm554_vm0  ;;  %vm556_vm3 = vcmp.lt.f32.partialorder %v552_v15, %v548_v13  ;;  %vm557_vm4 = vcmp.lt.f32.partialorder %v553_v16, %v549_v14  ;;  %v1594_v17 = vld [vmem:[#allocation7 + $0x38] sm:$0xff]  ;;  %v1593_v18 = vld [vmem:[#allocation7 + $0x30] sm:$0xff]  ;;  %s1897_s1 = scalar_lea.hbm %s1896_s19, 32  ;;  %p1902_p13 = scmp.lt.s32.totalorder %s1896_s19, %s2424_s7 }
  0x62   : > { %vm1490_vm5 = vmpackc.low %vm557_vm4, %vm556_vm3  ;;  %777 = vmatpush.bf16.msra.mxu1 %v1594_v17  ;;  %1005 = vmatpush.bf16.msra.mxu3 %v1594_v17  ;;  %v1591_v20 = vld [vmem:[#allocation7 + $0x20] sm:$0xff]  ;;  %v1590_v21 = vld [vmem:[#allocation7 + $0x18] sm:$0xff]  ;;  %p1898_p4 = scmp.ne.s32.totalorder %s1896_s19, %s1897_s1  ;;  %p1903_p3 = scmp.lt.s32.totalorder %s1901_s11, %s1897_s1 }
  0x63   : > { %v2282_v22 = vld [vmem:[%s2421_s4] ss:$0 sm:$0xff]  ;;  %v1589_v23 = vld [vmem:[#allocation7 + $0x10] sm:$0xff]  ;;  %v1588_v26 = vld [vmem:[#allocation7 + $0x8] sm:$0xff] }
  0x64   : > { %618 = vmatpush.bf16.msra.mxu0 %v2236_v2  ;;  %893 = vmatpush.bf16.msra.mxu2 %v2236_v2  ;;  %v1587_v29 = vld [vmem:[#allocation7] sm:$0xff]  ;;  %p1899_p5 = pnand %p1898_p4, %p2107_p11  ;;  %p1904_p7 = por %p1903_p3, %p1902_p13 }
  0x66   : > { %778 = vmatpush.bf16.msra.mxu1 %v1593_v18  ;;  %1006 = vmatpush.bf16.msra.mxu3 %v1593_v18  ;;  %p1900_p6 = pneg %p1899_p5 }
  0x68   : > { %619 = vmatpush.bf16.msra.mxu0 %v2240_v3  ;;  %894 = vmatpush.bf16.msra.mxu2 %v2240_v3  ;;  %p1905_p8 = pnand %p1904_p7, %p1900_p6 }
  0x6a   : > { %779 = vmatpush.bf16.msra.mxu1 %v1592_v19  ;;  %1007 = vmatpush.bf16.msra.mxu3 %v1592_v19 }
  0x6c   : > { %620 = vmatpush.bf16.msra.mxu0 %v2244_v4  ;;  %895 = vmatpush.bf16.msra.mxu2 %v2244_v4 }
  0x6e   : > { %780 = vmatpush.bf16.msra.mxu1 %v1591_v20  ;;  %1008 = vmatpush.bf16.msra.mxu3 %v1591_v20 }
  0x70   : > { %621 = vmatpush.bf16.msra.mxu0 %v2248_v5  ;;  %896 = vmatpush.bf16.msra.mxu2 %v2248_v5 }
  0x72   : > { %781 = vmatpush.bf16.msra.mxu1 %v1590_v21  ;;  %1009 = vmatpush.bf16.msra.mxu3 %v1590_v21 }
  0x74   : > { %622 = vmatpush.bf16.msra.mxu0 %v2252_v6  ;;  %897 = vmatpush.bf16.msra.mxu2 %v2252_v6 }
  0x76   : > { %782 = vmatpush.bf16.msra.mxu1 %v1589_v23  ;;  %1010 = vmatpush.bf16.msra.mxu3 %v1589_v23 }
  0x78   : > { %623 = vmatpush.bf16.msra.mxu0 %v2260_v11  ;;  %898 = vmatpush.bf16.msra.mxu2 %v2260_v11 }
  0x7a   : > { %783 = vmatpush.bf16.msra.mxu1 %v1588_v26  ;;  %1011 = vmatpush.bf16.msra.mxu3 %v1588_v26 }
  0x7b   : > { %1489 = vmatmul.msk.bf16.vlgmr.msra.gmra.mxu0 %vm1488_vm2, %v2007_v12 }
  0x7c   : > { %1119 = vmatpush.bf16.msrb.mxu0 %v2229_v0 }
  0x7e   : > { %784 = vmatpush.bf16.msra.mxu1 %v1587_v29  ;;  %1012 = vmatpush.bf16.msra.mxu3 %v1587_v29  ;;  %v714_v29 = vld [vmem:[%s2297_s18 + $0x18] sm:$0xff] }
  0x80   : > { %1120 = vmatpush.bf16.msrb.mxu0 %v2232_v1 }
  0x82   : > { %1597 = vmatpush.bf16.msrb.mxu1 %v2229_v0 }
  0x84   : > { %1121 = vmatpush.bf16.msrb.mxu0 %v2236_v2 }
  0x86   : > { %1598 = vmatpush.bf16.msrb.mxu1 %v2232_v1 }
  0x88   : > { %1122 = vmatpush.bf16.msrb.mxu0 %v2240_v3 }
  0x8a   : > { %1599 = vmatpush.bf16.msrb.mxu1 %v2236_v2 }
  0x8b   : > { %1491 = vmatmul.msk.bf16.gmra.mxu0 %vm1490_vm5, %v2007_v12 }
  0x8c   : > { %1123 = vmatpush.bf16.msrb.mxu0 %v2244_v4 }
  0x8e   : > { %1600 = vmatpush.bf16.msrb.mxu1 %v2240_v3 }
  0x90   : > { %1124 = vmatpush.bf16.msrb.mxu0 %v2248_v5 }
  0x92   : > { %1601 = vmatpush.bf16.msrb.mxu1 %v2244_v4 }
  0x94   : > { %1125 = vmatpush.bf16.msrb.mxu0 %v2252_v6 }
  0x96   : > { %1602 = vmatpush.bf16.msrb.mxu1 %v2248_v5  ;;  %v711_v5 = vld [vmem:[%s2297_s18] sm:$0xff] }
  0x98   : > { %1126 = vmatpush.bf16.msrb.mxu0 %v2260_v11 }
  0x9a   : > { %1603 = vmatpush.bf16.msrb.mxu1 %v2252_v6  ;;  %v712_v6 = vld [vmem:[%s2297_s18 + $0x8] sm:$0xff] }
  0x9e   : > { %1604 = vmatpush.bf16.msrb.mxu1 %v2260_v11 }
  0xf8   : > { %v625_v24 = vpop.f32.mrf.mxu0 }
  0xf9   : > { %v626_v25 = vadd.f32 %v2282_v22, %v625_v24 }
  0xfb   : > { %v635_v27 = vsub.f32 0.0, %v626_v25 }
  0xfd   : > { %v639_v28 = vmul.f32 1.442695, %v635_v27 }
  0xff   : > { %1713 = vpow2.f32 %v639_v28  ;;  %v713_v28 = vld [vmem:[%s2297_s18 + $0x10] sm:$0xff] }
 0x100   : > { %v627_v30 = vpop.f32.mrf.mxu0 }
 0x101   : > { %v628_v31 = vadd.f32 %v2282_v22, %v627_v30 }
 0x103   : > { %v636_v32 = vsub.f32 0.0, %v628_v31 }
 0x105   : > { %v1714_v33 = vpop.eup %1713  ;;  %v641_v34 = vmul.f32 1.442695, %v636_v32  ;;  %v2308_v32 = vld [vmem:[%s2420_s3] ss:$0 sm:$0xff] }
 0x106   : > { %v647_v35 = vadd.f32 1.0, %v1714_v33 }
 0x107   : > { %1715 = vpow2.f32 %v641_v34 }
 0x108   : > { %1717 = vrcp.f32 %v647_v35  ;;  %v630_v36 = vpop.f32.mrf.mxu0  ;;  %v662_v55 = vand.u32 2147483648, %v647_v35  ;;  %vm656_vm7 = vweird.f32 %v647_v35  ;;  %v660_v56 = vand.u32 2147483647, %v647_v35 }
 0x109   : > { %v631_v37 = vadd.f32 %v2282_v22, %v630_v36 }
 0x10a   : > { %v663_v62 = vor.u32 1.1754944e-38, %v662_v55  ;;  %vm661_vm10 = vcmp.eq.f32.partialorder %v660_v56, 8.507059e+37 }
 0x10b   : > { %v637_v38 = vsub.f32 0.0, %v631_v37 }
 0x10d   : > { %v1716_v39 = vpop.eup %1715  ;;  %v643_v40 = vmul.f32 1.442695, %v637_v38 }
 0x10e   : > { %v1718_v41 = vpop.eup %1717  ;;  %v648_v42 = vadd.f32 1.0, %v1716_v39 }
 0x10f   : > { %1719 = vpow2.f32 %v643_v40  ;;  %v652_v43 = vmul.f32 %v1718_v41, %v647_v35  ;;  %vm657_vm6 = vweird.f32 %v1718_v41 }
 0x110   : > { %1721 = vrcp.f32 %v648_v42  ;;  %v632_v44 = vpop.f32.mrf.mxu0  ;;  %vm658_vm8 = vmor %vm656_vm7, %vm657_vm6  ;;  %v677_v58 = vand.u32 2147483648, %v648_v42  ;;  %v675_v61 = vand.u32 2147483647, %v648_v42  ;;  %vm671_vm11 = vweird.f32 %v648_v42 }
 0x111   : > { %v633_v45 = vadd.f32 %v2282_v22, %v632_v44  ;;  %v653_v46 = vsub.f32 1.0, %v652_v43 }
 0x112   : > { %v678_v4 = vor.u32 1.1754944e-38, %v677_v58  ;;  %vm676_vm13 = vcmp.eq.f32.partialorder %v675_v61, 8.507059e+37 }
 0x113   : > { %v638_v47 = vsub.f32 0.0, %v633_v45  ;;  %v654_v48 = vmul.f32 %v1718_v41, %v653_v46 }
 0x115   : > { %v1720_v49 = vpop.eup %1719  ;;  %v645_v50 = vmul.f32 1.442695, %v638_v47  ;;  %v655_v53 = vadd.f32 %v1718_v41, %v654_v48 }
 0x116   : > { %v1722_v51 = vpop.eup %1721  ;;  %v649_v52 = vadd.f32 1.0, %v1720_v49 }
 0x117   : > { %1723 = vpow2.f32 %v645_v50  ;;  %v667_v54 = vmul.f32 %v1722_v51, %v648_v42  ;;  %v659_v59 = vsel %vm658_vm8, %v1718_v41, %v655_v53  ;;  %vm672_vm9 = vweird.f32 %v1722_v51 }
 0x118   : > { %1725 = vrcp.f32 %v649_v52  ;;  %v664_v3 = vsel %vm661_vm10, %v663_v62, %v659_v59  ;;  %vm673_vm12 = vmor %vm671_vm11, %vm672_vm9  ;;  %v692_v16 = vand.u32 2147483648, %v649_v52  ;;  %vm686_vm2 = vweird.f32 %v649_v52 }
 0x119   : > { %v668_v57 = vsub.f32 1.0, %v667_v54  ;;  %vm715_vm14 = vcmp.lt.f32.partialorder %v711_v5, %v664_v3  ;;  %v690_v17 = vand.u32 2147483647, %v649_v52 }
 0x11a   : > { %v693_v24 = vor.u32 1.1754944e-38, %v692_v16 }
 0x11b   : > { %v669_v60 = vmul.f32 %v1722_v51, %v668_v57  ;;  %vm691_vm5 = vcmp.eq.f32.partialorder %v690_v17, 8.507059e+37 }
 0x11d   : > { %v1724_v63 = vpop.eup %1723  ;;  %v670_v0 = vadd.f32 %v1722_v51, %v669_v60 }
 0x11e   : > { %v1726_v1 = vpop.eup %1725  ;;  %v650_v2 = vadd.f32 1.0, %v1724_v63 }
 0x11f   : > { %v674_v7 = vsel %vm673_vm12, %v1722_v51, %v670_v0  ;;  %v682_v8 = vmul.f32 %v1726_v1, %v649_v52  ;;  %vm687_vm1 = vweird.f32 %v1726_v1 }
 0x120   : > { %1727 = vrcp.f32 %v650_v2  ;;  %v679_v9 = vsel %vm676_vm13, %v678_v4, %v674_v7  ;;  %vm688_vm3 = vmor %vm686_vm2, %vm687_vm1  ;;  %v707_v19 = vand.u32 2147483648, %v650_v2  ;;  %v705_v23 = vand.u32 2147483647, %v650_v2 }
 0x121   : > { %vm716_vm15 = vcmp.lt.f32.partialorder %v712_v6, %v679_v9  ;;  %v683_v10 = vsub.f32 1.0, %v682_v8  ;;  %vm701_vm6 = vweird.f32 %v650_v2 }
 0x122   : > { %vm1528_vm0 = vmpackc.low %vm716_vm15, %vm715_vm14  ;;  %v708_v27 = vor.u32 1.1754944e-38, %v707_v19  ;;  %vm706_vm8 = vcmp.eq.f32.partialorder %v705_v23, 8.507059e+37 }
 0x123   : > { %1529 = vmatmul.msk.bf16.vlgmr.msra.gmra.mxu1 %vm1528_vm0, %v2007_v12  ;;  %v684_v11 = vmul.f32 %v1726_v1, %v683_v10 }
 0x125   : > { %v685_v14 = vadd.f32 %v1726_v1, %v684_v11 }
 0x126   : > { %v1728_v13 = vpop.eup %1727 }
 0x127   : > { %v697_v15 = vmul.f32 %v1728_v13, %v650_v2  ;;  %v689_v20 = vsel %vm688_vm3, %v1726_v1, %v685_v14  ;;  %vm702_vm4 = vweird.f32 %v1728_v13  ;;  %v1533_v14 = vld [vmem:[%s2223_s22 + $0x28] sm:$0xff] }
 0x128   : > { %v694_v26 = vsel %vm691_vm5, %v693_v24, %v689_v20  ;;  %vm703_vm7 = vmor %vm701_vm6, %vm702_vm4 }
 0x129   : > { %v698_v18 = vsub.f32 1.0, %v697_v15  ;;  %vm717_vm9 = vcmp.lt.f32.partialorder %v713_v28, %v694_v26 }
 0x12b   : > { %v699_v21 = vmul.f32 %v1728_v13, %v698_v18 }
 0x12d   : > { %v700_v25 = vadd.f32 %v1728_v13, %v699_v21 }
 0x12f   : > { %v704_v30 = vsel %vm703_vm7, %v1728_v13, %v700_v25  ;;  %v1532_v13 = vld [vmem:[%s2223_s22 + $0x20] sm:$0xff] }
 0x130   : > { %v709_v31 = vsel %vm706_vm8, %v708_v27, %v704_v30 }
 0x131   : > { %vm718_vm10 = vcmp.lt.f32.partialorder %v714_v29, %v709_v31 }
 0x132   : > { %vm1530_vm11 = vmpackc.low %vm718_vm10, %vm717_vm9 }
 0x133   : > { %1531 = vmatmul.msk.bf16.gmra.mxu1 %vm1530_vm11, %v2007_v12 }
 0x1a0   : > { %v786_v33 = vpop.f32.mrf.mxu1 }
 0x1a1   : > { %v787_v34 = vadd.f32 %v2308_v32, %v786_v33 }
 0x1a3   : > { %v796_v35 = vsub.f32 0.0, %v787_v34 }
 0x1a5   : > { %v800_v36 = vmul.f32 1.442695, %v796_v35 }
 0x1a7   : > { %1729 = vpow2.f32 %v800_v36  ;;  %v1534_v36 = vld [vmem:[%s2223_s22 + $0x30] sm:$0xff] }
 0x1a8   : > { %v788_v37 = vpop.f32.mrf.mxu1 }
 0x1a9   : > { %v789_v38 = vadd.f32 %v2308_v32, %v788_v37  ;;  %v1535_v37 = vld [vmem:[%s2223_s22 + $0x38] sm:$0xff] }
 0x1ab   : > { %v797_v39 = vsub.f32 0.0, %v789_v38 }
 0x1ad   : > { %v1730_v40 = vpop.eup %1729  ;;  %v802_v41 = vmul.f32 1.442695, %v797_v39 }
 0x1ae   : > { %v808_v42 = vadd.f32 1.0, %v1730_v40 }
 0x1af   : > { %1731 = vpow2.f32 %v802_v41 }
 0x1b0   : > { %1733 = vrcp.f32 %v808_v42  ;;  %v791_v43 = vpop.f32.mrf.mxu1  ;;  %v823_v62 = vand.u32 2147483648, %v808_v42  ;;  %vm817_vm13 = vweird.f32 %v808_v42  ;;  %v821_v63 = vand.u32 2147483647, %v808_v42 }
 0x1b1   : > { %v792_v44 = vadd.f32 %v2308_v32, %v791_v43 }
 0x1b2   : > { %v824_v5 = vor.u32 1.1754944e-38, %v823_v62  ;;  %vm822_vm0 = vcmp.eq.f32.partialorder %v821_v63, 8.507059e+37 }
 0x1b3   : > { %v798_v45 = vsub.f32 0.0, %v792_v44 }
 0x1b5   : > { %v1732_v46 = vpop.eup %1731  ;;  %v804_v47 = vmul.f32 1.442695, %v798_v45 }
 0x1b6   : > { %v1734_v48 = vpop.eup %1733  ;;  %v809_v49 = vadd.f32 1.0, %v1732_v46 }
 0x1b7   : > { %1735 = vpow2.f32 %v804_v47  ;;  %v813_v50 = vmul.f32 %v1734_v48, %v808_v42  ;;  %vm818_vm12 = vweird.f32 %v1734_v48 }
 0x1b8   : > { %1737 = vrcp.f32 %v809_v49  ;;  %v793_v51 = vpop.f32.mrf.mxu1  ;;  %vm819_vm14 = vmor %vm817_vm13, %vm818_vm12  ;;  %v838_v1 = vand.u32 2147483648, %v809_v49  ;;  %v836_v4 = vand.u32 2147483647, %v809_v49  ;;  %vm832_vm1 = vweird.f32 %v809_v49 }
 0x1b9   : > { %v794_v52 = vadd.f32 %v2308_v32, %v793_v51  ;;  %v814_v53 = vsub.f32 1.0, %v813_v50 }
 0x1ba   : > { %v839_v11 = vor.u32 1.1754944e-38, %v838_v1  ;;  %vm837_vm3 = vcmp.eq.f32.partialorder %v836_v4, 8.507059e+37 }
 0x1bb   : > { %v799_v54 = vsub.f32 0.0, %v794_v52  ;;  %v815_v55 = vmul.f32 %v1734_v48, %v814_v53 }
 0x1bd   : > { %v1736_v56 = vpop.eup %1735  ;;  %v806_v57 = vmul.f32 1.442695, %v799_v54  ;;  %v816_v60 = vadd.f32 %v1734_v48, %v815_v55 }
 0x1be   : > { %v1738_v58 = vpop.eup %1737  ;;  %v810_v59 = vadd.f32 1.0, %v1736_v56 }
 0x1bf   : > { %1739 = vpow2.f32 %v806_v57  ;;  %v828_v61 = vmul.f32 %v1738_v58, %v809_v49  ;;  %v820_v2 = vsel %vm819_vm14, %v1734_v48, %v816_v60  ;;  %vm833_vm15 = vweird.f32 %v1738_v58 }
 0x1c0   : > { %1741 = vrcp.f32 %v810_v59  ;;  %v825_v10 = vsel %vm822_vm0, %v824_v5, %v820_v2  ;;  %vm834_vm2 = vmor %vm832_vm1, %vm833_vm15  ;;  %v853_v24 = vand.u32 2147483648, %v810_v59  ;;  %vm847_vm8 = vweird.f32 %v810_v59 }
 0x1c1   : > { %v829_v0 = vsub.f32 1.0, %v828_v61  ;;  %vm877_vm4 = vcmp.lt.f32.partialorder %v1532_v13, %v825_v10  ;;  %v851_v25 = vand.u32 2147483647, %v810_v59 }
 0x1c2   : > { %v854_v31 = vor.u32 1.1754944e-38, %v853_v24 }
 0x1c3   : > { %v830_v3 = vmul.f32 %v1738_v58, %v829_v0  ;;  %vm852_vm11 = vcmp.eq.f32.partialorder %v851_v25, 8.507059e+37 }
 0x1c5   : > { %v1740_v6 = vpop.eup %1739  ;;  %v831_v7 = vadd.f32 %v1738_v58, %v830_v3 }
 0x1c6   : > { %v1742_v8 = vpop.eup %1741  ;;  %v811_v9 = vadd.f32 1.0, %v1740_v6 }
 0x1c7   : > { %v835_v15 = vsel %vm834_vm2, %v1738_v58, %v831_v7  ;;  %v843_v16 = vmul.f32 %v1742_v8, %v810_v59  ;;  %vm848_vm7 = vweird.f32 %v1742_v8 }
 0x1c8   : > { %1743 = vrcp.f32 %v811_v9  ;;  %v840_v17 = vsel %vm837_vm3, %v839_v11, %v835_v15  ;;  %vm849_vm9 = vmor %vm847_vm8, %vm848_vm7  ;;  %v868_v27 = vand.u32 2147483648, %v811_v9  ;;  %v866_v30 = vand.u32 2147483647, %v811_v9 }
 0x1c9   : > { %vm878_vm5 = vcmp.lt.f32.partialorder %v1533_v14, %v840_v17  ;;  %v844_v18 = vsub.f32 1.0, %v843_v16  ;;  %vm862_vm12 = vweird.f32 %v811_v9 }
 0x1ca   : > { %vm1540_vm6 = vmpackc.low %vm878_vm5, %vm877_vm4  ;;  %v869_v35 = vor.u32 1.1754944e-38, %v868_v27  ;;  %vm867_vm14 = vcmp.eq.f32.partialorder %v866_v30, 8.507059e+37 }
 0x1cb   : > { %1541 = vmatmul.msk.bf16.vlgmr.msra.gmra.mxu2 %vm1540_vm6, %v2007_v12  ;;  %v845_v19 = vmul.f32 %v1742_v8, %v844_v18 }
 0x1cd   : > { %v846_v21 = vadd.f32 %v1742_v8, %v845_v19 }
 0x1ce   : > { %v1744_v20 = vpop.eup %1743 }
 0x1cf   : > { %v858_v23 = vmul.f32 %v1744_v20, %v811_v9  ;;  %v850_v28 = vsel %vm849_vm9, %v1742_v8, %v846_v21  ;;  %vm863_vm10 = vweird.f32 %v1744_v20  ;;  %v1545_v21 = vld [vmem:[%s2297_s18 + $0x28] sm:$0xff] }
 0x1d0   : > { %v855_v34 = vsel %vm852_vm11, %v854_v31, %v850_v28  ;;  %vm864_vm13 = vmor %vm862_vm12, %vm863_vm10 }
 0x1d1   : > { %v859_v26 = vsub.f32 1.0, %v858_v23  ;;  %vm879_vm15 = vcmp.lt.f32.partialorder %v1534_v36, %v855_v34 }
 0x1d3   : > { %v860_v29 = vmul.f32 %v1744_v20, %v859_v26 }
 0x1d5   : > { %v861_v33 = vadd.f32 %v1744_v20, %v860_v29 }
 0x1d7   : > { %v865_v38 = vsel %vm864_vm13, %v1744_v20, %v861_v33  ;;  %v1544_v20 = vld [vmem:[%s2297_s18 + $0x20] sm:$0xff] }
 0x1d8   : > { %v870_v39 = vsel %vm867_vm14, %v869_v35, %v865_v38 }
 0x1d9   : > { %vm880_vm0 = vcmp.lt.f32.partialorder %v1535_v37, %v870_v39 }
 0x1da   : > { %vm1542_vm1 = vmpackc.low %vm880_vm0, %vm879_vm15 }
 0x1db   : > { %1543 = vmatmul.msk.bf16.gmra.mxu2 %vm1542_vm1, %v2007_v12 }
 0x24e   : > { %v900_v40 = vpop.f32.mrf.mxu2 }
 0x24f   : > { %v901_v41 = vadd.f32 %v2282_v22, %v900_v40 }
 0x251   : > { %v910_v42 = vsub.f32 0.0, %v901_v41 }
 0x253   : > { %v914_v43 = vmul.f32 1.442695, %v910_v42 }
 0x255   : > { %1745 = vpow2.f32 %v914_v43  ;;  %v1546_v43 = vld [vmem:[%s2297_s18 + $0x30] sm:$0xff] }
 0x256   : > { %v902_v44 = vpop.f32.mrf.mxu2 }
 0x257   : > { %v903_v45 = vadd.f32 %v2282_v22, %v902_v44  ;;  %v1547_v44 = vld [vmem:[%s2297_s18 + $0x38] sm:$0xff] }
 0x259   : > { %v911_v46 = vsub.f32 0.0, %v903_v45 }
 0x25b   : > { %v1746_v47 = vpop.eup %1745  ;;  %v916_v48 = vmul.f32 1.442695, %v911_v46 }
 0x25c   : > { %v922_v49 = vadd.f32 1.0, %v1746_v47 }
 0x25d   : > { %1747 = vpow2.f32 %v916_v48 }
 0x25e   : > { %1749 = vrcp.f32 %v922_v49  ;;  %v905_v50 = vpop.f32.mrf.mxu2  ;;  %v937_v5 = vand.u32 2147483648, %v922_v49  ;;  %vm931_vm3 = vweird.f32 %v922_v49  ;;  %v935_v6 = vand.u32 2147483647, %v922_v49 }
 0x25f   : > { %v906_v51 = vadd.f32 %v2282_v22, %v905_v50 }
 0x260   : > { %v938_v13 = vor.u32 1.1754944e-38, %v937_v5  ;;  %vm936_vm6 = vcmp.eq.f32.partialorder %v935_v6, 8.507059e+37 }
 0x261   : > { %v912_v52 = vsub.f32 0.0, %v906_v51 }
 0x263   : > { %v1748_v53 = vpop.eup %1747  ;;  %v918_v54 = vmul.f32 1.442695, %v912_v52 }
 0x264   : > { %v1750_v55 = vpop.eup %1749  ;;  %v923_v56 = vadd.f32 1.0, %v1748_v53 }
 0x265   : > { %1751 = vpow2.f32 %v918_v54  ;;  %v927_v57 = vmul.f32 %v1750_v55, %v922_v49  ;;  %vm932_vm2 = vweird.f32 %v1750_v55 }
 0x266   : > { %1753 = vrcp.f32 %v923_v56  ;;  %v907_v58 = vpop.f32.mrf.mxu2  ;;  %vm933_vm4 = vmor %vm931_vm3, %vm932_vm2  ;;  %v952_v8 = vand.u32 2147483648, %v923_v56  ;;  %v950_v11 = vand.u32 2147483647, %v923_v56  ;;  %vm946_vm7 = vweird.f32 %v923_v56 }
 0x267   : > { %v908_v59 = vadd.f32 %v2282_v22, %v907_v58  ;;  %v928_v60 = vsub.f32 1.0, %v927_v57 }
 0x268   : > { %v953_v19 = vor.u32 1.1754944e-38, %v952_v8  ;;  %vm951_vm9 = vcmp.eq.f32.partialorder %v950_v11, 8.507059e+37 }
 0x269   : > { %v913_v61 = vsub.f32 0.0, %v908_v59  ;;  %v929_v62 = vmul.f32 %v1750_v55, %v928_v60 }
 0x26b   : > { %v1752_v63 = vpop.eup %1751  ;;  %v920_v0 = vmul.f32 1.442695, %v913_v61  ;;  %v930_v3 = vadd.f32 %v1750_v55, %v929_v62 }
 0x26c   : > { %v1754_v1 = vpop.eup %1753  ;;  %v924_v2 = vadd.f32 1.0, %v1752_v63 }
 0x26d   : > { %1755 = vpow2.f32 %v920_v0  ;;  %v942_v4 = vmul.f32 %v1754_v1, %v923_v56  ;;  %v934_v9 = vsel %vm933_vm4, %v1750_v55, %v930_v3  ;;  %vm947_vm5 = vweird.f32 %v1754_v1 }
 0x26e   : > { %1757 = vrcp.f32 %v924_v2  ;;  %v939_v18 = vsel %vm936_vm6, %v938_v13, %v934_v9  ;;  %vm948_vm8 = vmor %vm946_vm7, %vm947_vm5  ;;  %v967_v31 = vand.u32 2147483648, %v924_v2  ;;  %vm961_vm14 = vweird.f32 %v924_v2 }
 0x26f   : > { %v943_v7 = vsub.f32 1.0, %v942_v4  ;;  %vm991_vm10 = vcmp.lt.f32.partialorder %v1544_v20, %v939_v18  ;;  %v965_v33 = vand.u32 2147483647, %v924_v2 }
 0x270   : > { %v968_v39 = vor.u32 1.1754944e-38, %v967_v31 }
 0x271   : > { %v944_v10 = vmul.f32 %v1754_v1, %v943_v7  ;;  %vm966_vm1 = vcmp.eq.f32.partialorder %v965_v33, 8.507059e+37 }
 0x273   : > { %v1756_v14 = vpop.eup %1755  ;;  %v945_v15 = vadd.f32 %v1754_v1, %v944_v10 }
 0x274   : > { %v1758_v16 = vpop.eup %1757  ;;  %v925_v17 = vadd.f32 1.0, %v1756_v14 }
 0x275   : > { %v949_v23 = vsel %vm948_vm8, %v1754_v1, %v945_v15  ;;  %v957_v24 = vmul.f32 %v1758_v16, %v924_v2  ;;  %vm962_vm13 = vweird.f32 %v1758_v16 }
 0x276   : > { %1759 = vrcp.f32 %v925_v17  ;;  %v954_v25 = vsel %vm951_vm9, %v953_v19, %v949_v23  ;;  %vm963_vm15 = vmor %vm961_vm14, %vm962_vm13  ;;  %v982_v35 = vand.u32 2147483648, %v925_v17  ;;  %v980_v38 = vand.u32 2147483647, %v925_v17 }
 0x277   : > { %vm992_vm11 = vcmp.lt.f32.partialorder %v1545_v21, %v954_v25  ;;  %v958_v26 = vsub.f32 1.0, %v957_v24  ;;  %vm976_vm2 = vweird.f32 %v925_v17 }
 0x278   : > { %vm1552_vm12 = vmpackc.low %vm992_vm11, %vm991_vm10  ;;  %v983_v42 = vor.u32 1.1754944e-38, %v982_v35  ;;  %vm981_vm4 = vcmp.eq.f32.partialorder %v980_v38, 8.507059e+37 }
 0x279   : > { %1553 = vmatmul.msk.bf16.vlgmr.msra.gmra.mxu3 %vm1552_vm12, %v2007_v12  ;;  %v959_v27 = vmul.f32 %v1758_v16, %v958_v26 }
 0x27b   : > { %v960_v29 = vadd.f32 %v1758_v16, %v959_v27  ;;  %v1556_v27 = vld [vmem:[%s2223_s22 + $0x40] sm:$0xff] }
 0x27c   : > { %v1760_v28 = vpop.eup %1759 }
 0x27d   : > { %v972_v30 = vmul.f32 %v1760_v28, %v925_v17  ;;  %v964_v36 = vsel %vm963_vm15, %v1758_v16, %v960_v29  ;;  %vm977_vm0 = vweird.f32 %v1760_v28 }
 0x27e   : > { %v969_v41 = vsel %vm966_vm1, %v968_v39, %v964_v36  ;;  %vm978_vm3 = vmor %vm976_vm2, %vm977_vm0 }
 0x27f   : > { %v973_v34 = vsub.f32 1.0, %v972_v30  ;;  %vm993_vm5 = vcmp.lt.f32.partialorder %v1546_v43, %v969_v41 }
 0x281   : > { %v974_v37 = vmul.f32 %v1760_v28, %v973_v34 }
 0x283   : > { %v975_v40 = vadd.f32 %v1760_v28, %v974_v37 }
 0x285   : > { %v979_v45 = vsel %vm978_vm3, %v1760_v28, %v975_v40  ;;  %v1557_v28 = vld [vmem:[%s2223_s22 + $0x48] sm:$0xff] }
 0x286   : > { %v984_v46 = vsel %vm981_vm4, %v983_v42, %v979_v45 }
 0x287   : > { %vm994_vm6 = vcmp.lt.f32.partialorder %v1547_v44, %v984_v46 }
 0x288   : > { %vm1554_vm7 = vmpackc.low %vm994_vm6, %vm993_vm5 }
 0x289   : > { %1555 = vmatmul.msk.bf16.gmra.mxu3 %vm1554_vm7, %v2007_v12 }
 0x2fc   : > { %v1014_v47 = vpop.f32.mrf.mxu3 }
 0x2fd   : > { %v1015_v48 = vadd.f32 %v2308_v32, %v1014_v47 }
 0x2ff   : > { %v1024_v49 = vsub.f32 0.0, %v1015_v48 }
 0x301   : > { %v1028_v50 = vmul.f32 1.442695, %v1024_v49  ;;  %v1558_v49 = vld [vmem:[%s2223_s22 + $0x50] sm:$0xff] }
 0x303   : > { %1761 = vpow2.f32 %v1028_v50  ;;  %v1559_v50 = vld [vmem:[%s2223_s22 + $0x58] sm:$0xff] }
 0x304   : > { %v1016_v51 = vpop.f32.mrf.mxu3 }
 0x305   : > { %v1017_v52 = vadd.f32 %v2308_v32, %v1016_v51 }
 0x307   : > { %v1025_v53 = vsub.f32 0.0, %v1017_v52 }
 0x309   : > { %v1762_v54 = vpop.eup %1761  ;;  %v1030_v55 = vmul.f32 1.442695, %v1025_v53 }
 0x30a   : > { %v1036_v56 = vadd.f32 1.0, %v1762_v54 }
 0x30b   : > { %1763 = vpow2.f32 %v1030_v55 }
 0x30c   : > { %1765 = vrcp.f32 %v1036_v56  ;;  %v1019_v57 = vpop.f32.mrf.mxu3  ;;  %v1051_v4 = vand.u32 2147483648, %v1036_v56  ;;  %v1049_v7 = vand.u32 2147483647, %v1036_v56  ;;  %vm1045_vm9 = vweird.f32 %v1036_v56 }
 0x30d   : > { %v1020_v58 = vadd.f32 %v2308_v32, %v1019_v57 }
 0x30e   : > { %v1052_v14 = vor.u32 1.1754944e-38, %v1051_v4  ;;  %vm1050_vm11 = vcmp.eq.f32.partialorder %v1049_v7, 8.507059e+37 }
 0x30f   : > { %v1026_v59 = vsub.f32 0.0, %v1020_v58 }
 0x311   : > { %v1764_v60 = vpop.eup %1763  ;;  %v1032_v61 = vmul.f32 1.442695, %v1026_v59 }
 0x312   : > { %v1766_v62 = vpop.eup %1765  ;;  %v1037_v63 = vadd.f32 1.0, %v1764_v60 }
 0x313   : > { %v1041_v0 = vmul.f32 %v1766_v62, %v1036_v56  ;;  %1767 = vpow2.f32 %v1032_v61  ;;  %vm1046_vm8 = vweird.f32 %v1766_v62 }
 0x314   : > { %1769 = vrcp.f32 %v1037_v63  ;;  %v1021_v1 = vpop.f32.mrf.mxu3  ;;  %vm1047_vm10 = vmor %vm1045_vm9, %vm1046_vm8  ;;  %v1066_v18 = vand.u32 2147483648, %v1037_v63  ;;  %v1064_v20 = vand.u32 2147483647, %v1037_v63  ;;  %vm1060_vm13 = vweird.f32 %v1037_v63 }
 0x315   : > { %v1022_v2 = vadd.f32 %v2308_v32, %v1021_v1  ;;  %v1042_v3 = vsub.f32 1.0, %v1041_v0 }
 0x316   : > { %v1067_v26 = vor.u32 1.1754944e-38, %v1066_v18  ;;  %vm1065_vm15 = vcmp.eq.f32.partialorder %v1064_v20, 8.507059e+37 }
 0x317   : > { %v1027_v5 = vsub.f32 0.0, %v1022_v2  ;;  %v1043_v6 = vmul.f32 %v1766_v62, %v1042_v3 }
 0x319   : > { %v1768_v8 = vpop.eup %1767  ;;  %v1034_v9 = vmul.f32 1.442695, %v1027_v5  ;;  %v1044_v10 = vadd.f32 %v1766_v62, %v1043_v6 }
 0x31a   : > { %v1770_v11 = vpop.eup %1769  ;;  %v1038_v13 = vadd.f32 1.0, %v1768_v8 }
 0x31b   : > { %v1056_v15 = vmul.f32 %v1770_v11, %v1037_v63  ;;  %1771 = vpow2.f32 %v1034_v9  ;;  %v1048_v16 = vsel %vm1047_vm10, %v1766_v62, %v1044_v10  ;;  %vm1061_vm12 = vweird.f32 %v1770_v11 }
 0x31c   : > { %1773 = vrcp.f32 %v1038_v13  ;;  %v1053_v32 = vsel %vm1050_vm11, %v1052_v14, %v1048_v16  ;;  %vm1062_vm14 = vmor %vm1060_vm13, %vm1061_vm12  ;;  %v1081_v34 = vand.u32 2147483648, %v1038_v13  ;;  %v1079_v36 = vand.u32 2147483647, %v1038_v13 }
 0x31d   : > { %v1057_v17 = vsub.f32 1.0, %v1056_v15  ;;  %1214 = vst [vmem:[%s2335_s23] sm:$0xff] %v1053_v32  ;;  %vm1105_vm0 = vcmp.lt.f32.partialorder %v1556_v27, %v1053_v32  ;;  %vm1075_vm4 = vweird.f32 %v1038_v13 }
 0x31e   : > { %v1082_v39 = vor.u32 1.1754944e-38, %v1081_v34  ;;  %vm1080_vm6 = vcmp.eq.f32.partialorder %v1079_v36, 8.507059e+37 }
 0x31f   : > { %v1058_v19 = vmul.f32 %v1770_v11, %v1057_v17 }
 0x321   : > { %v1772_v21 = vpop.eup %1771  ;;  %v1059_v23 = vadd.f32 %v1770_v11, %v1058_v19 }
 0x322   : > { %v1774_v24 = vpop.eup %1773  ;;  %v1039_v25 = vadd.f32 1.0, %v1772_v21 }
 0x323   : > { %v1071_v29 = vmul.f32 %v1774_v24, %v1038_v13  ;;  %v1063_v30 = vsel %vm1062_vm14, %v1770_v11, %v1059_v23  ;;  %vm1076_vm3 = vweird.f32 %v1774_v24 }
 0x324   : > { %1775 = vrcp.f32 %v1039_v25  ;;  %v1068_v31 = vsel %vm1065_vm15, %v1067_v26, %v1063_v30  ;;  %vm1077_vm5 = vmor %vm1075_vm4, %vm1076_vm3  ;;  %v1096_v44 = vand.u32 2147483648, %v1039_v25  ;;  %v1094_v46 = vand.u32 2147483647, %v1039_v25 }
 0x325   : > { %vm1106_vm1 = vcmp.lt.f32.partialorder %v1557_v28, %v1068_v31  ;;  %1215 = vst [vmem:[%s2335_s23 + $0x8] sm:$0xff] %v1068_v31  ;;  %v1072_v33 = vsub.f32 1.0, %v1071_v29  ;;  %vm1090_vm8 = vweird.f32 %v1039_v25 }
 0x326   : > { %vm1564_vm2 = vmpackc.low %vm1106_vm1, %vm1105_vm0  ;;  %v1097_v48 = vor.u32 1.1754944e-38, %v1096_v44  ;;  %vm1095_vm10 = vcmp.eq.f32.partialorder %v1094_v46, 8.507059e+37 }
 0x327   : > { %1565 = vmatmul.msk.bf16.vlgmr.msrb.gmra.mxu0 %vm1564_vm2, %v2007_v12  ;;  %v1073_v35 = vmul.f32 %v1774_v24, %v1072_v33 }
 0x329   : > { %v1074_v37 = vadd.f32 %v1774_v24, %v1073_v35 }
 0x32a   : > { %v1776_v38 = vpop.eup %1775 }
 0x32b   : > { %v1086_v40 = vmul.f32 %v1776_v38, %v1039_v25  ;;  %v1078_v41 = vsel %vm1077_vm5, %v1774_v24, %v1074_v37  ;;  %vm1091_vm7 = vweird.f32 %v1776_v38 }
 0x32c   : > { %v1083_v42 = vsel %vm1080_vm6, %v1082_v39, %v1078_v41  ;;  %vm1092_vm9 = vmor %vm1090_vm8, %vm1091_vm7 }
 0x32d   : > { %v1087_v43 = vsub.f32 1.0, %v1086_v40  ;;  %1216 = vst [vmem:[%s2335_s23 + $0x10] sm:$0xff] %v1083_v42  ;;  %vm1107_vm11 = vcmp.lt.f32.partialorder %v1558_v49, %v1083_v42 }
 0x32f   : > { %v1088_v45 = vmul.f32 %v1776_v38, %v1087_v43 }
 0x331   : > { %v1089_v47 = vadd.f32 %v1776_v38, %v1088_v45 }
 0x333   : > { %v1093_v51 = vsel %vm1092_vm9, %v1776_v38, %v1089_v47 }
 0x334   : > { %v1098_v52 = vsel %vm1095_vm10, %v1097_v48, %v1093_v51 }
 0x335   : > { %vm1108_vm12 = vcmp.lt.f32.partialorder %v1559_v50, %v1098_v52  ;;  %1217 = vst [vmem:[%s2335_s23 + $0x18] sm:$0xff] %v1098_v52 }
 0x336   : > { %vm1566_vm13 = vmpackc.low %vm1108_vm12, %vm1107_vm11 }
 0x337   : > { %1567 = vmatmul.msk.bf16.vlgmr.msrb.gmra.mxu1 %vm1566_vm13, %v2007_v12 }
 0x338   : > { %1908 = shalt.err (!%p1905_p8)
}
 0x339   : > { %s2008_s21 = smov 128   ;;  %s2009_s29 = smov 8  }
 0x33a   : > { %1635 = dma.vmem_to_hbm [thread:$0]  (%p2107_p11), %s1241_s25, 512, %s1243_s14, %s1223_s15, %s2008_s21, %s2008_s21, %s2009_s29  }
 0x33b   : > { %s2373_s23 = scalar_lea.vmem [#allocation12], %s2207_s24  ;;  %s1256_s26 = scalar_lea.hbm %s2425_s8, %s1595_s10 }
 0x33c   : > { %s1257_s13 = sshll.u32 %s2373_s23, 4  ;;  %s1259_s2 = sshll.u32 %s1256_s26, 4  ;;  %s1258_s13 = int_to_ptr.vmem [resolvable:$true] %s1257_s13  ;;  %s1260_s2 = int_to_ptr.hbm [resolvable:$true] %s1259_s2 }
 0x33d   : > { %s1228_s9 = scalar_lea.sflag [#allocation13], %s2204_s20  ;;  %s1923_s10 = sshra.s32 %s1260_s2, 4  ;;  %s1924_s10 = int_to_ptr.hbm [resolvable:$true] %s1923_s10 }
 0x33e   : > { %s1925_s14 = scalar_lea.hbm %s1924_s10, 32  ;;  %s1929_s1 = scalar_lea.hbm %s2425_s8, 64 }
 0x33f   : > { %p1926_p9 = scmp.ne.s32.totalorder %s1924_s10, %s1925_s14  ;;  %p1930_p0 = scmp.lt.s32.totalorder %s1924_s10, %s2425_s8 }
 0x340   : > { %p1931_p4 = scmp.lt.s32.totalorder %s1929_s1, %s1925_s14 }
 0x341   : > { %p1927_p10 = pnand %p1926_p9, %p2107_p11 }
 0x342   : > { %p1932_p5 = por %p1931_p4, %p1930_p0 }
 0x343   : > { %p1928_p1 = pneg %p1927_p10 }
 0x345   : > { %p1933_p6 = pnand %p1932_p5, %p1928_p1 }
 0x3a4   : > { %v1128_v12 = vpop.f32.mrf.mxu0 }
 0x3a5   : > { %v1129_v53 = vadd.f32 %v2282_v22, %v1128_v12 }
 0x3a7   : > { %v1138_v54 = vsub.f32 0.0, %v1129_v53 }
 0x3a9   : > { %v1142_v55 = vmul.f32 1.442695, %v1138_v54 }
 0x3ab   : > { %1777 = vpow2.f32 %v1142_v55 }
 0x3ac   : > { %v1130_v56 = vpop.f32.mrf.mxu0 }
 0x3ad   : > { %v1131_v57 = vadd.f32 %v2282_v22, %v1130_v56 }
 0x3af   : > { %v1139_v58 = vsub.f32 0.0, %v1131_v57 }
 0x3b1   : > { %v1778_v59 = vpop.eup %1777  ;;  %v1144_v60 = vmul.f32 1.442695, %v1139_v58 }
 0x3b2   : > { %v1150_v61 = vadd.f32 1.0, %v1778_v59 }
 0x3b3   : > { %1779 = vpow2.f32 %v1144_v60 }
 0x3b4   : > { %1781 = vrcp.f32 %v1150_v61  ;;  %v1133_v62 = vpop.f32.mrf.mxu1  ;;  %v1165_v9 = vand.u32 2147483648, %v1150_v61  ;;  %v1163_v11 = vand.u32 2147483647, %v1150_v61  ;;  %vm1159_vm15 = vweird.f32 %v1150_v61 }
 0x3b5   : > { %v1134_v63 = vadd.f32 %v2282_v22, %v1133_v62 }
 0x3b6   : > { %v1166_v17 = vor.u32 1.1754944e-38, %v1165_v9  ;;  %vm1164_vm1 = vcmp.eq.f32.partialorder %v1163_v11, 8.507059e+37 }
 0x3b7   : > { %v1140_v0 = vsub.f32 0.0, %v1134_v63 }
 0x3b9   : > { %v1780_v1 = vpop.eup %1779  ;;  %v1146_v2 = vmul.f32 1.442695, %v1140_v0 }
 0x3ba   : > { %v1782_v3 = vpop.eup %1781  ;;  %v1151_v4 = vadd.f32 1.0, %v1780_v1 }
 0x3bb   : > { %v1155_v5 = vmul.f32 %v1782_v3, %v1150_v61  ;;  %1783 = vpow2.f32 %v1146_v2  ;;  %vm1160_vm14 = vweird.f32 %v1782_v3 }
 0x3bc   : > { %1785 = vrcp.f32 %v1151_v4  ;;  %v1135_v6 = vpop.f32.mrf.mxu1  ;;  %vm1161_vm0 = vmor %vm1159_vm15, %vm1160_vm14  ;;  %v1180_v23 = vand.u32 2147483648, %v1151_v4  ;;  %v1178_v25 = vand.u32 2147483647, %v1151_v4  ;;  %vm1174_vm3 = vweird.f32 %v1151_v4 }
 0x3bd   : > { %v1156_v7 = vsub.f32 1.0, %v1155_v5  ;;  %v1136_v8 = vadd.f32 %v2282_v22, %v1135_v6 }
 0x3be   : > { %v1181_v29 = vor.u32 1.1754944e-38, %v1180_v23  ;;  %vm1179_vm5 = vcmp.eq.f32.partialorder %v1178_v25, 8.507059e+37 }
 0x3bf   : > { %v1157_v10 = vmul.f32 %v1782_v3, %v1156_v7  ;;  %v1141_v13 = vsub.f32 0.0, %v1136_v8 }
 0x3c1   : > { %v1784_v14 = vpop.eup %1783  ;;  %v1158_v15 = vadd.f32 %v1782_v3, %v1157_v10  ;;  %v1148_v16 = vmul.f32 1.442695, %v1141_v13 }
 0x3c2   : > { %v1786_v32 = vpop.eup %1785  ;;  %v1152_v18 = vadd.f32 1.0, %v1784_v14 }
 0x3c3   : > { %v1162_v19 = vsel %vm1161_vm0, %v1782_v3, %v1158_v15  ;;  %v1170_v20 = vmul.f32 %v1786_v32, %v1151_v4  ;;  %1787 = vpow2.f32 %v1148_v16  ;;  %vm1175_vm2 = vweird.f32 %v1786_v32 }
 0x3c4   : > { %v1167_v21 = vsel %vm1164_vm1, %v1166_v17, %v1162_v19  ;;  %1789 = vrcp.f32 %v1152_v18  ;;  %vm1176_vm4 = vmor %vm1174_vm3, %vm1175_vm2  ;;  %v1195_v36 = vand.u32 2147483648, %v1152_v18  ;;  %v1193_v38 = vand.u32 2147483647, %v1152_v18 }
 0x3c5   : > { %1218 = vst [vmem:[%s2373_s23] sm:$0xff] %v1167_v21  ;;  %v1171_v22 = vsub.f32 1.0, %v1170_v20  ;;  %vm1189_vm7 = vweird.f32 %v1152_v18 }
 0x3c6   : > { %v1196_v41 = vor.u32 1.1754944e-38, %v1195_v36  ;;  %vm1194_vm9 = vcmp.eq.f32.partialorder %v1193_v38, 8.507059e+37 }
 0x3c7   : > { %v1172_v24 = vmul.f32 %v1786_v32, %v1171_v22 }
 0x3c9   : > { %v1788_v26 = vpop.eup %1787  ;;  %v1173_v27 = vadd.f32 %v1786_v32, %v1172_v24 }
 0x3ca   : > { %v1790_v28 = vpop.eup %1789  ;;  %v1153_v30 = vadd.f32 1.0, %v1788_v26 }
 0x3cb   : > { %v1177_v31 = vsel %vm1176_vm4, %v1786_v32, %v1173_v27  ;;  %v1185_v33 = vmul.f32 %v1790_v28, %v1152_v18  ;;  %vm1190_vm6 = vweird.f32 %v1790_v28 }
 0x3cc   : > { %v1182_v34 = vsel %vm1179_vm5, %v1181_v29, %v1177_v31  ;;  %1791 = vrcp.f32 %v1153_v30  ;;  %vm1191_vm8 = vmor %vm1189_vm7, %vm1190_vm6  ;;  %v1210_v46 = vand.u32 2147483648, %v1153_v30  ;;  %v1208_v48 = vand.u32 2147483647, %v1153_v30 }
 0x3cd   : > { %1219 = vst [vmem:[%s2373_s23 + $0x8] sm:$0xff] %v1182_v34  ;;  %v1186_v35 = vsub.f32 1.0, %v1185_v33  ;;  %vm1204_vm11 = vweird.f32 %v1153_v30 }
 0x3ce   : > { %v1211_v50 = vor.u32 1.1754944e-38, %v1210_v46  ;;  %vm1209_vm13 = vcmp.eq.f32.partialorder %v1208_v48, 8.507059e+37 }
 0x3cf   : > { %v1187_v37 = vmul.f32 %v1790_v28, %v1186_v35 }
 0x3d1   : > { %v1188_v39 = vadd.f32 %v1790_v28, %v1187_v37 }
 0x3d2   : > { %v1792_v40 = vpop.eup %1791 }
 0x3d3   : > { %v1192_v42 = vsel %vm1191_vm8, %v1790_v28, %v1188_v39  ;;  %v1200_v43 = vmul.f32 %v1792_v40, %v1153_v30  ;;  %vm1205_vm10 = vweird.f32 %v1792_v40 }
 0x3d4   : > { %v1197_v44 = vsel %vm1194_vm9, %v1196_v41, %v1192_v42  ;;  %vm1206_vm12 = vmor %vm1204_vm11, %vm1205_vm10 }
 0x3d5   : > { %1220 = vst [vmem:[%s2373_s23 + $0x10] sm:$0xff] %v1197_v44  ;;  %v1201_v45 = vsub.f32 1.0, %v1200_v43 }
 0x3d7   : > { %v1202_v47 = vmul.f32 %v1792_v40, %v1201_v45 }
 0x3d9   : > { %v1203_v49 = vadd.f32 %v1792_v40, %v1202_v47 }
 0x3db   : > { %v1207_v51 = vsel %vm1206_vm12, %v1792_v40, %v1203_v49 }
 0x3dc   : > { %v1212_v52 = vsel %vm1209_vm13, %v1211_v50, %v1207_v51 }
 0x3dd   : > { %1221 = vst [vmem:[%s2373_s23 + $0x18] sm:$0xff] %v1212_v52 }
 0x3de   : > { %1936 = shalt.err (!%p1933_p6)
}
 0x3df   : > { %1636 = dma.vmem_to_hbm [thread:$0]  (%p2107_p11), %s1258_s13, 512, %s1260_s2, %s1228_s9, %s2008_s21, %s2008_s21, %s2009_s29  }
 0x3e0 PF: > { %s1274_s11 = sand.u32 1, %s1975_s27   ;;  %p1647_p13 = pnand %p1432_p2, %p2111_p12 }
 0x3e1   : > { %s1275_s12 = scalar_lea.sflag [#allocation4], %s1274_s11 }
 0x3e2   : > { %p1648_p3 = pneg %p1647_p13 }
 0x3e4   : > { %1966 = dma.done.wait (%p1648_p3), %s1275_s12, 512  }
 0x3e5   : > { %1968 = vsyncadd (%p1648_p3), %s1275_s12, 4294966784  ;;  %s1285_s18 = scalar_lea.sflag [#allocation13], %s1274_s11 }
 0x3e6   : > { %1970 = dma.done.wait (%p1648_p3), %s1285_s18, 512  }
 0x3e7   : > { %1972 = vsyncadd (%p1648_p3), %s1285_s18, 4294966784  ;;  %s2444_s30 = sld [smem:[#allocation26_spill]]  ;;  %s2447_s27 = smov %s1979_s28 }
 0x3e8   : > { %s2445_s17 = sld [smem:[#allocation25_spill]] }
 0x3e9   : > { %s2446_s29 = sld [smem:[#allocation27_spill]] }
 0x3ed   : > { %p29_p11 = scmp.ge.s32.totalorder %s2444_s30, 4  }
 0x3ee   : > { %s2448_s28 = smov %s2445_s17 }
 0x3ef   :  { %31 = sbr.rel (!%p29_p11) target bundleno = 13 (0xd), region = 155 }
 0x3f4   :  { %1291 = vsyncpa [#allocation3], 1 }
 0x3f5   :  { %1293 = vsyncpa [#allocation3 + $0x1], 1 }
 0x3f6   :  { %1294 = vsyncpa [#allocation6], 1 }
 0x3f7   :  { %1295 = vsyncpa [#allocation9], 1 }
 0x3f8   :  { %1297 = vsyncpa [#allocation9 + $0x1], 1 }
 0x3f9   :  { %1298 = vsyncpa [#allocation4], 1 }
 0x3fa   :  { %1300 = vsyncpa [#allocation4 + $0x1], 1 }
 0x3fb   :  { %1301 = vsyncpa [#allocation13], 1 }
 0x3fc   :  { %1303 = vsyncpa [#allocation13 + $0x1], 1 }

</bundles_post_ra>
